<compile_context>
chip_gen: v7x
topology: tpu7x:2x2x1
jax: 0.10.0
libtpu: 0.0.40
codegen_flags: <defaults>
</compile_context>

<pallas_src>
import functools

import jax
import jax.numpy as jnp
import numpy as np
from jax import lax
from jax.experimental import pallas as pl
from jax.experimental.pallas import tpu as pltpu

D_INPUT = 3
N_FREQS = 10
LOG_SPACE = True


def _cdiv(a: int, b: int) -> int:
    return -(-a // b)


def _round_up(v: int, m: int) -> int:
    return _cdiv(v, m) * m


def _freq_bands(n_freqs: int, log_space: bool) -> np.ndarray:
    if log_space:
        return (2.0 ** np.linspace(0.0, n_freqs - 1, n_freqs)).astype(np.float32)
    return np.linspace(2.0 ** 0.0, 2.0 ** (n_freqs - 1), n_freqs).astype(np.float32)


def _pe_kernel(x_ref, o_ref, *, d_input, freq_values):
    """Encode one (tile, d_input) block into a (tile, d_output) block, lane-dense.

    Output column groups (each d_input wide), matching the reference concat order:
      [ x | sin(f0*x) | cos(f0*x) | sin(f1*x) | cos(f1*x) | ... ]
    """
    x = x_ref[...]                                   # (tile, d_input)
    n_freqs = len(freq_values)
    d_output = d_input * (1 + 2 * n_freqs)
    tile = x.shape[0]

    # ---- Per-column metadata on a single (1, d_output) vreg, rebuilt once per grid step.
    # Only iota / compare / select / scalar constants (no int div/mod, no dense array
    # constants) so it lowers cleanly; ~100 ops total, negligible vs. the tile compute.
    c = lax.broadcasted_iota(jnp.int32, (1, d_output), 1)
    mult = jnp.zeros((1, d_output), jnp.float32)     # per-column frequency (1.0 passthrough)
    lane = jnp.zeros((1, d_output), jnp.int32)       # which input dim feeds this column
    is_sin = c < 0                                   # all-False start
    groups = [(1.0, False)] + [(f, trig == 0) for f in freq_values for trig in (0, 1)]
    for g, (fval, sin_grp) in enumerate(groups):     # 1 + 2*n_freqs groups of d_input cols
        lo, hi = g * d_input, (g + 1) * d_input
        in_g = (c >= lo) & (c < hi)
        mult = jnp.where(in_g, jnp.float32(fval), mult)
        lane = jnp.where(in_g, c - lo, lane)
        if sin_grp:
            is_sin = is_sin | in_g
    is_pass = c < d_input

    # ---- Lane-dense phases: replicate x into output-column order (pure selects, bitwise
    # exact) and scale by the per-column frequency (exact power-of-two multiply for the
    # log-spaced bands), so z is bit-identical to the reference's x * freq.
    xf32 = x.astype(jnp.float32)
    xt = jnp.broadcast_to(xf32[:, d_input - 1:d_input], (tile, d_output))
    for i in range(d_input - 2, -1, -1):
        xi = jnp.broadcast_to(xf32[:, i:i + 1], (tile, d_output))
        xt = jnp.where(lane == i, xi, xt)
    z = xt * mult                                    # (tile, d_output) dense phases

    # One dense sin + one dense cos EUP pass, per-column select, single contiguous store.
    enc = jnp.where(is_pass, z, jnp.where(is_sin, jnp.sin(z), jnp.cos(z)))
    o_ref[...] = enc.astype(o_ref.dtype)


def positional_encoder(x: jax.Array,
                       d_input: int = D_INPUT,
                       n_freqs: int = N_FREQS,
                       log_space: bool = LOG_SPACE,
                       tile_n: int = 8192,
                       out_dtype=None) -> jax.Array:
    assert x.shape[-1] == d_input
    lead = x.shape[:-1]
    x2 = x.reshape(-1, d_input)
    n = x2.shape[0]
    d_output = d_input * (1 + 2 * n_freqs)
    out_dtype = x2.dtype if out_dtype is None else out_dtype
    freq_values = tuple(float(f) for f in _freq_bands(n_freqs, log_space))

    # Row tile: large (multiple of 8) to amortize the ~0.35 us per-grid-step overhead,
    # but keep >= ~4 grid steps so the v7x megacore can shard the row axis across 2 TCs.
    tile = max(8, min(_round_up(tile_n, 8), _round_up(_cdiv(n, 4), 8)))
    grid = _cdiv(n, tile)

    kernel = functools.partial(_pe_kernel, d_input=d_input, freq_values=freq_values)

    out = pl.pallas_call(
        kernel,
        out_shape=jax.ShapeDtypeStruct((n, d_output), out_dtype),
        grid_spec=pltpu.PrefetchScalarGridSpec(
            num_scalar_prefetch=0,
            grid=(grid,),
            in_specs=[pl.BlockSpec((tile, d_input), lambda i: (i, 0))],
            out_specs=pl.BlockSpec((tile, d_output), lambda i: (i, 0)),
        ),
        compiler_params=pltpu.CompilerParams(
            dimension_semantics=("parallel",),
            # tile=8192: 2x(4 MiB in) + 2x(4 MiB out) pipeline buffers + dense in-kernel
            # temporaries; 48 MiB stays under v7x's 64 MiB physical VMEM.
            vmem_limit_bytes=48 * 1024 * 1024,
        ),
    )(x2)
    return out.reshape(*lead, d_output)


def _reference(x, d_input=D_INPUT, n_freqs=N_FREQS, log_space=LOG_SPACE):
    parts = [x]
    for f in _freq_bands(n_freqs, log_space):
        parts.append(jnp.sin(x * f))
        parts.append(jnp.cos(x * f))
    return jnp.concatenate(parts, axis=-1)


if __name__ == "__main__":
    key = jax.random.PRNGKey(0)
    # PositionalEncoder has no learned parameters; only the input points (N, 3).
    x = jax.random.normal(key, (16, D_INPUT), dtype=jnp.float32)
    out = jax.block_until_ready(positional_encoder(x))
    assert out.shape == (16, D_INPUT * (1 + 2 * N_FREQS))
    np.testing.assert_allclose(np.asarray(out), np.asarray(_reference(x)),
                               rtol=1e-5, atol=1e-5)

    # Ragged N (not a multiple of the row tile): handled by Pallas block masking in the
    # kernel -- no pre-pad of x and no post-kernel out[:n] slice copy.
    x2 = jax.random.normal(jax.random.PRNGKey(1), (20, D_INPUT), dtype=jnp.float32)
    out2 = jax.block_until_ready(positional_encoder(x2))
    np.testing.assert_allclose(np.asarray(out2), np.asarray(_reference(x2)),
                               rtol=1e-5, atol=1e-5)

    print("KERNEL_OK")
</pallas_src>

<mosaic_0001>
module attributes {stable_mosaic.version = 11 : i64} {
  func.func @_pe_kernel(%arg0: i32, %arg1: memref<8x3xf32, #tpu.memory_space<vmem>>, %arg2: memref<8x63xf32, #tpu.memory_space<vmem>>) attributes {dimension_semantics = [#tpu.dimension_semantics<parallel>], iteration_bounds = array<i64: 2>, scalar_prefetch = 0 : i64, scratch_operands = 0 : i64, tpu.core_type = #tpu.core_type<tc>, window_params = [{transform_indices = @transform_0, window_bounds = array<i64: 8, 3>}, {transform_indices = @transform_1, window_bounds = array<i64: 8, 63>}]} {
    %c0 = arith.constant 0 : index
    %c0_0 = arith.constant 0 : index
    %0 = vector.load %arg1[%c0, %c0_0] : memref<8x3xf32, #tpu.memory_space<vmem>>, vector<8x3xf32>
    %1 = tpu.iota {dimensions = array<i32: 1>} : vector<1x63xi32>
    %cst = arith.constant 0.000000e+00 : f32
    %2 = vector.broadcast %cst : f32 to vector<1x63xf32>
    %c0_i32 = arith.constant 0 : i32
    %3 = vector.broadcast %c0_i32 : i32 to vector<1x63xi32>
    %c0_i32_1 = arith.constant 0 : i32
    %4 = vector.broadcast %c0_i32_1 : i32 to vector<1x63xi32>
    %5 = arith.cmpi slt, %1, %4 : vector<1x63xi32>
    %c0_i32_2 = arith.constant 0 : i32
    %6 = vector.broadcast %c0_i32_2 : i32 to vector<1x63xi32>
    %7 = arith.cmpi sge, %1, %6 : vector<1x63xi32>
    %c3_i32 = arith.constant 3 : i32
    %8 = vector.broadcast %c3_i32 : i32 to vector<1x63xi32>
    %9 = arith.cmpi slt, %1, %8 : vector<1x63xi32>
    %10 = arith.andi %7, %9 : vector<1x63xi1>
    %cst_3 = arith.constant 1.000000e+00 : f32
    %11 = vector.broadcast %cst_3 : f32 to vector<1x63xf32>
    %12 = arith.select %10, %11, %2 : vector<1x63xi1>, vector<1x63xf32>
    %c0_i32_4 = arith.constant 0 : i32
    %13 = vector.broadcast %c0_i32_4 : i32 to vector<1x63xi32>
    %14 = arith.subi %1, %13 : vector<1x63xi32>
    %15 = arith.select %10, %14, %3 : vector<1x63xi1>, vector<1x63xi32>
    %c3_i32_5 = arith.constant 3 : i32
    %16 = vector.broadcast %c3_i32_5 : i32 to vector<1x63xi32>
    %17 = arith.cmpi sge, %1, %16 : vector<1x63xi32>
    %c6_i32 = arith.constant 6 : i32
    %18 = vector.broadcast %c6_i32 : i32 to vector<1x63xi32>
    %19 = arith.cmpi slt, %1, %18 : vector<1x63xi32>
    %20 = arith.andi %17, %19 : vector<1x63xi1>
    %cst_6 = arith.constant 1.000000e+00 : f32
    %21 = vector.broadcast %cst_6 : f32 to vector<1x63xf32>
    %22 = arith.select %20, %21, %12 : vector<1x63xi1>, vector<1x63xf32>
    %c3_i32_7 = arith.constant 3 : i32
    %23 = vector.broadcast %c3_i32_7 : i32 to vector<1x63xi32>
    %24 = arith.subi %1, %23 : vector<1x63xi32>
    %25 = arith.select %20, %24, %15 : vector<1x63xi1>, vector<1x63xi32>
    %26 = arith.ori %5, %20 : vector<1x63xi1>
    %c6_i32_8 = arith.constant 6 : i32
    %27 = vector.broadcast %c6_i32_8 : i32 to vector<1x63xi32>
    %28 = arith.cmpi sge, %1, %27 : vector<1x63xi32>
    %c9_i32 = arith.constant 9 : i32
    %29 = vector.broadcast %c9_i32 : i32 to vector<1x63xi32>
    %30 = arith.cmpi slt, %1, %29 : vector<1x63xi32>
    %31 = arith.andi %28, %30 : vector<1x63xi1>
    %cst_9 = arith.constant 1.000000e+00 : f32
    %32 = vector.broadcast %cst_9 : f32 to vector<1x63xf32>
    %33 = arith.select %31, %32, %22 : vector<1x63xi1>, vector<1x63xf32>
    %c6_i32_10 = arith.constant 6 : i32
    %34 = vector.broadcast %c6_i32_10 : i32 to vector<1x63xi32>
    %35 = arith.subi %1, %34 : vector<1x63xi32>
    %36 = arith.select %31, %35, %25 : vector<1x63xi1>, vector<1x63xi32>
    %c9_i32_11 = arith.constant 9 : i32
    %37 = vector.broadcast %c9_i32_11 : i32 to vector<1x63xi32>
    %38 = arith.cmpi sge, %1, %37 : vector<1x63xi32>
    %c12_i32 = arith.constant 12 : i32
    %39 = vector.broadcast %c12_i32 : i32 to vector<1x63xi32>
    %40 = arith.cmpi slt, %1, %39 : vector<1x63xi32>
    %41 = arith.andi %38, %40 : vector<1x63xi1>
    %cst_12 = arith.constant 2.000000e+00 : f32
    %42 = vector.broadcast %cst_12 : f32 to vector<1x63xf32>
    %43 = arith.select %41, %42, %33 : vector<1x63xi1>, vector<1x63xf32>
    %c9_i32_13 = arith.constant 9 : i32
    %44 = vector.broadcast %c9_i32_13 : i32 to vector<1x63xi32>
    %45 = arith.subi %1, %44 : vector<1x63xi32>
    %46 = arith.select %41, %45, %36 : vector<1x63xi1>, vector<1x63xi32>
    %47 = arith.ori %26, %41 : vector<1x63xi1>
    %c12_i32_14 = arith.constant 12 : i32
    %48 = vector.broadcast %c12_i32_14 : i32 to vector<1x63xi32>
    %49 = arith.cmpi sge, %1, %48 : vector<1x63xi32>
    %c15_i32 = arith.constant 15 : i32
    %50 = vector.broadcast %c15_i32 : i32 to vector<1x63xi32>
    %51 = arith.cmpi slt, %1, %50 : vector<1x63xi32>
    %52 = arith.andi %49, %51 : vector<1x63xi1>
    %cst_15 = arith.constant 2.000000e+00 : f32
    %53 = vector.broadcast %cst_15 : f32 to vector<1x63xf32>
    %54 = arith.select %52, %53, %43 : vector<1x63xi1>, vector<1x63xf32>
    %c12_i32_16 = arith.constant 12 : i32
    %55 = vector.broadcast %c12_i32_16 : i32 to vector<1x63xi32>
    %56 = arith.subi %1, %55 : vector<1x63xi32>
    %57 = arith.select %52, %56, %46 : vector<1x63xi1>, vector<1x63xi32>
    %c15_i32_17 = arith.constant 15 : i32
    %58 = vector.broadcast %c15_i32_17 : i32 to vector<1x63xi32>
    %59 = arith.cmpi sge, %1, %58 : vector<1x63xi32>
    %c18_i32 = arith.constant 18 : i32
    %60 = vector.broadcast %c18_i32 : i32 to vector<1x63xi32>
    %61 = arith.cmpi slt, %1, %60 : vector<1x63xi32>
    %62 = arith.andi %59, %61 : vector<1x63xi1>
    %cst_18 = arith.constant 4.000000e+00 : f32
    %63 = vector.broadcast %cst_18 : f32 to vector<1x63xf32>
    %64 = arith.select %62, %63, %54 : vector<1x63xi1>, vector<1x63xf32>
    %c15_i32_19 = arith.constant 15 : i32
    %65 = vector.broadcast %c15_i32_19 : i32 to vector<1x63xi32>
    %66 = arith.subi %1, %65 : vector<1x63xi32>
    %67 = arith.select %62, %66, %57 : vector<1x63xi1>, vector<1x63xi32>
    %68 = arith.ori %47, %62 : vector<1x63xi1>
    %c18_i32_20 = arith.constant 18 : i32
    %69 = vector.broadcast %c18_i32_20 : i32 to vector<1x63xi32>
    %70 = arith.cmpi sge, %1, %69 : vector<1x63xi32>
    %c21_i32 = arith.constant 21 : i32
    %71 = vector.broadcast %c21_i32 : i32 to vector<1x63xi32>
    %72 = arith.cmpi slt, %1, %71 : vector<1x63xi32>
    %73 = arith.andi %70, %72 : vector<1x63xi1>
    %cst_21 = arith.constant 4.000000e+00 : f32
    %74 = vector.broadcast %cst_21 : f32 to vector<1x63xf32>
    %75 = arith.select %73, %74, %64 : vector<1x63xi1>, vector<1x63xf32>
    %c18_i32_22 = arith.constant 18 : i32
    %76 = vector.broadcast %c18_i32_22 : i32 to vector<1x63xi32>
    %77 = arith.subi %1, %76 : vector<1x63xi32>
    %78 = arith.select %73, %77, %67 : vector<1x63xi1>, vector<1x63xi32>
    %c21_i32_23 = arith.constant 21 : i32
    %79 = vector.broadcast %c21_i32_23 : i32 to vector<1x63xi32>
    %80 = arith.cmpi sge, %1, %79 : vector<1x63xi32>
    %c24_i32 = arith.constant 24 : i32
    %81 = vector.broadcast %c24_i32 : i32 to vector<1x63xi32>
    %82 = arith.cmpi slt, %1, %81 : vector<1x63xi32>
    %83 = arith.andi %80, %82 : vector<1x63xi1>
    %cst_24 = arith.constant 8.000000e+00 : f32
    %84 = vector.broadcast %cst_24 : f32 to vector<1x63xf32>
    %85 = arith.select %83, %84, %75 : vector<1x63xi1>, vector<1x63xf32>
    %c21_i32_25 = arith.constant 21 : i32
    %86 = vector.broadcast %c21_i32_25 : i32 to vector<1x63xi32>
    %87 = arith.subi %1, %86 : vector<1x63xi32>
    %88 = arith.select %83, %87, %78 : vector<1x63xi1>, vector<1x63xi32>
    %89 = arith.ori %68, %83 : vector<1x63xi1>
    %c24_i32_26 = arith.constant 24 : i32
    %90 = vector.broadcast %c24_i32_26 : i32 to vector<1x63xi32>
    %91 = arith.cmpi sge, %1, %90 : vector<1x63xi32>
    %c27_i32 = arith.constant 27 : i32
    %92 = vector.broadcast %c27_i32 : i32 to vector<1x63xi32>
    %93 = arith.cmpi slt, %1, %92 : vector<1x63xi32>
    %94 = arith.andi %91, %93 : vector<1x63xi1>
    %cst_27 = arith.constant 8.000000e+00 : f32
    %95 = vector.broadcast %cst_27 : f32 to vector<1x63xf32>
    %96 = arith.select %94, %95, %85 : vector<1x63xi1>, vector<1x63xf32>
    %c24_i32_28 = arith.constant 24 : i32
    %97 = vector.broadcast %c24_i32_28 : i32 to vector<1x63xi32>
    %98 = arith.subi %1, %97 : vector<1x63xi32>
    %99 = arith.select %94, %98, %88 : vector<1x63xi1>, vector<1x63xi32>
    %c27_i32_29 = arith.constant 27 : i32
    %100 = vector.broadcast %c27_i32_29 : i32 to vector<1x63xi32>
    %101 = arith.cmpi sge, %1, %100 : vector<1x63xi32>
    %c30_i32 = arith.constant 30 : i32
    %102 = vector.broadcast %c30_i32 : i32 to vector<1x63xi32>
    %103 = arith.cmpi slt, %1, %102 : vector<1x63xi32>
    %104 = arith.andi %101, %103 : vector<1x63xi1>
    %cst_30 = arith.constant 1.600000e+01 : f32
    %105 = vector.broadcast %cst_30 : f32 to vector<1x63xf32>
    %106 = arith.select %104, %105, %96 : vector<1x63xi1>, vector<1x63xf32>
    %c27_i32_31 = arith.constant 27 : i32
    %107 = vector.broadcast %c27_i32_31 : i32 to vector<1x63xi32>
    %108 = arith.subi %1, %107 : vector<1x63xi32>
    %109 = arith.select %104, %108, %99 : vector<1x63xi1>, vector<1x63xi32>
    %110 = arith.ori %89, %104 : vector<1x63xi1>
    %c30_i32_32 = arith.constant 30 : i32
    %111 = vector.broadcast %c30_i32_32 : i32 to vector<1x63xi32>
    %112 = arith.cmpi sge, %1, %111 : vector<1x63xi32>
    %c33_i32 = arith.constant 33 : i32
    %113 = vector.broadcast %c33_i32 : i32 to vector<1x63xi32>
    %114 = arith.cmpi slt, %1, %113 : vector<1x63xi32>
    %115 = arith.andi %112, %114 : vector<1x63xi1>
    %cst_33 = arith.constant 1.600000e+01 : f32
    %116 = vector.broadcast %cst_33 : f32 to vector<1x63xf32>
    %117 = arith.select %115, %116, %106 : vector<1x63xi1>, vector<1x63xf32>
    %c30_i32_34 = arith.constant 30 : i32
    %118 = vector.broadcast %c30_i32_34 : i32 to vector<1x63xi32>
    %119 = arith.subi %1, %118 : vector<1x63xi32>
    %120 = arith.select %115, %119, %109 : vector<1x63xi1>, vector<1x63xi32>
    %c33_i32_35 = arith.constant 33 : i32
    %121 = vector.broadcast %c33_i32_35 : i32 to vector<1x63xi32>
    %122 = arith.cmpi sge, %1, %121 : vector<1x63xi32>
    %c36_i32 = arith.constant 36 : i32
    %123 = vector.broadcast %c36_i32 : i32 to vector<1x63xi32>
    %124 = arith.cmpi slt, %1, %123 : vector<1x63xi32>
    %125 = arith.andi %122, %124 : vector<1x63xi1>
    %cst_36 = arith.constant 3.200000e+01 : f32
    %126 = vector.broadcast %cst_36 : f32 to vector<1x63xf32>
    %127 = arith.select %125, %126, %117 : vector<1x63xi1>, vector<1x63xf32>
    %c33_i32_37 = arith.constant 33 : i32
    %128 = vector.broadcast %c33_i32_37 : i32 to vector<1x63xi32>
    %129 = arith.subi %1, %128 : vector<1x63xi32>
    %130 = arith.select %125, %129, %120 : vector<1x63xi1>, vector<1x63xi32>
    %131 = arith.ori %110, %125 : vector<1x63xi1>
    %c36_i32_38 = arith.constant 36 : i32
    %132 = vector.broadcast %c36_i32_38 : i32 to vector<1x63xi32>
    %133 = arith.cmpi sge, %1, %132 : vector<1x63xi32>
    %c39_i32 = arith.constant 39 : i32
    %134 = vector.broadcast %c39_i32 : i32 to vector<1x63xi32>
    %135 = arith.cmpi slt, %1, %134 : vector<1x63xi32>
    %136 = arith.andi %133, %135 : vector<1x63xi1>
    %cst_39 = arith.constant 3.200000e+01 : f32
    %137 = vector.broadcast %cst_39 : f32 to vector<1x63xf32>
    %138 = arith.select %136, %137, %127 : vector<1x63xi1>, vector<1x63xf32>
    %c36_i32_40 = arith.constant 36 : i32
    %139 = vector.broadcast %c36_i32_40 : i32 to vector<1x63xi32>
    %140 = arith.subi %1, %139 : vector<1x63xi32>
    %141 = arith.select %136, %140, %130 : vector<1x63xi1>, vector<1x63xi32>
    %c39_i32_41 = arith.constant 39 : i32
    %142 = vector.broadcast %c39_i32_41 : i32 to vector<1x63xi32>
    %143 = arith.cmpi sge, %1, %142 : vector<1x63xi32>
    %c42_i32 = arith.constant 42 : i32
    %144 = vector.broadcast %c42_i32 : i32 to vector<1x63xi32>
    %145 = arith.cmpi slt, %1, %144 : vector<1x63xi32>
    %146 = arith.andi %143, %145 : vector<1x63xi1>
    %cst_42 = arith.constant 6.400000e+01 : f32
    %147 = vector.broadcast %cst_42 : f32 to vector<1x63xf32>
    %148 = arith.select %146, %147, %138 : vector<1x63xi1>, vector<1x63xf32>
    %c39_i32_43 = arith.constant 39 : i32
    %149 = vector.broadcast %c39_i32_43 : i32 to vector<1x63xi32>
    %150 = arith.subi %1, %149 : vector<1x63xi32>
    %151 = arith.select %146, %150, %141 : vector<1x63xi1>, vector<1x63xi32>
    %152 = arith.ori %131, %146 : vector<1x63xi1>
    %c42_i32_44 = arith.constant 42 : i32
    %153 = vector.broadcast %c42_i32_44 : i32 to vector<1x63xi32>
    %154 = arith.cmpi sge, %1, %153 : vector<1x63xi32>
    %c45_i32 = arith.constant 45 : i32
    %155 = vector.broadcast %c45_i32 : i32 to vector<1x63xi32>
    %156 = arith.cmpi slt, %1, %155 : vector<1x63xi32>
    %157 = arith.andi %154, %156 : vector<1x63xi1>
    %cst_45 = arith.constant 6.400000e+01 : f32
    %158 = vector.broadcast %cst_45 : f32 to vector<1x63xf32>
    %159 = arith.select %157, %158, %148 : vector<1x63xi1>, vector<1x63xf32>
    %c42_i32_46 = arith.constant 42 : i32
    %160 = vector.broadcast %c42_i32_46 : i32 to vector<1x63xi32>
    %161 = arith.subi %1, %160 : vector<1x63xi32>
    %162 = arith.select %157, %161, %151 : vector<1x63xi1>, vector<1x63xi32>
    %c45_i32_47 = arith.constant 45 : i32
    %163 = vector.broadcast %c45_i32_47 : i32 to vector<1x63xi32>
    %164 = arith.cmpi sge, %1, %163 : vector<1x63xi32>
    %c48_i32 = arith.constant 48 : i32
    %165 = vector.broadcast %c48_i32 : i32 to vector<1x63xi32>
    %166 = arith.cmpi slt, %1, %165 : vector<1x63xi32>
    %167 = arith.andi %164, %166 : vector<1x63xi1>
    %cst_48 = arith.constant 1.280000e+02 : f32
    %168 = vector.broadcast %cst_48 : f32 to vector<1x63xf32>
    %169 = arith.select %167, %168, %159 : vector<1x63xi1>, vector<1x63xf32>
    %c45_i32_49 = arith.constant 45 : i32
    %170 = vector.broadcast %c45_i32_49 : i32 to vector<1x63xi32>
    %171 = arith.subi %1, %170 : vector<1x63xi32>
    %172 = arith.select %167, %171, %162 : vector<1x63xi1>, vector<1x63xi32>
    %173 = arith.ori %152, %167 : vector<1x63xi1>
    %c48_i32_50 = arith.constant 48 : i32
    %174 = vector.broadcast %c48_i32_50 : i32 to vector<1x63xi32>
    %175 = arith.cmpi sge, %1, %174 : vector<1x63xi32>
    %c51_i32 = arith.constant 51 : i32
    %176 = vector.broadcast %c51_i32 : i32 to vector<1x63xi32>
    %177 = arith.cmpi slt, %1, %176 : vector<1x63xi32>
    %178 = arith.andi %175, %177 : vector<1x63xi1>
    %cst_51 = arith.constant 1.280000e+02 : f32
    %179 = vector.broadcast %cst_51 : f32 to vector<1x63xf32>
    %180 = arith.select %178, %179, %169 : vector<1x63xi1>, vector<1x63xf32>
    %c48_i32_52 = arith.constant 48 : i32
    %181 = vector.broadcast %c48_i32_52 : i32 to vector<1x63xi32>
    %182 = arith.subi %1, %181 : vector<1x63xi32>
    %183 = arith.select %178, %182, %172 : vector<1x63xi1>, vector<1x63xi32>
    %c51_i32_53 = arith.constant 51 : i32
    %184 = vector.broadcast %c51_i32_53 : i32 to vector<1x63xi32>
    %185 = arith.cmpi sge, %1, %184 : vector<1x63xi32>
    %c54_i32 = arith.constant 54 : i32
    %186 = vector.broadcast %c54_i32 : i32 to vector<1x63xi32>
    %187 = arith.cmpi slt, %1, %186 : vector<1x63xi32>
    %188 = arith.andi %185, %187 : vector<1x63xi1>
    %cst_54 = arith.constant 2.560000e+02 : f32
    %189 = vector.broadcast %cst_54 : f32 to vector<1x63xf32>
    %190 = arith.select %188, %189, %180 : vector<1x63xi1>, vector<1x63xf32>
    %c51_i32_55 = arith.constant 51 : i32
    %191 = vector.broadcast %c51_i32_55 : i32 to vector<1x63xi32>
    %192 = arith.subi %1, %191 : vector<1x63xi32>
    %193 = arith.select %188, %192, %183 : vector<1x63xi1>, vector<1x63xi32>
    %194 = arith.ori %173, %188 : vector<1x63xi1>
    %c54_i32_56 = arith.constant 54 : i32
    %195 = vector.broadcast %c54_i32_56 : i32 to vector<1x63xi32>
    %196 = arith.cmpi sge, %1, %195 : vector<1x63xi32>
    %c57_i32 = arith.constant 57 : i32
    %197 = vector.broadcast %c57_i32 : i32 to vector<1x63xi32>
    %198 = arith.cmpi slt, %1, %197 : vector<1x63xi32>
    %199 = arith.andi %196, %198 : vector<1x63xi1>
    %cst_57 = arith.constant 2.560000e+02 : f32
    %200 = vector.broadcast %cst_57 : f32 to vector<1x63xf32>
    %201 = arith.select %199, %200, %190 : vector<1x63xi1>, vector<1x63xf32>
    %c54_i32_58 = arith.constant 54 : i32
    %202 = vector.broadcast %c54_i32_58 : i32 to vector<1x63xi32>
    %203 = arith.subi %1, %202 : vector<1x63xi32>
    %204 = arith.select %199, %203, %193 : vector<1x63xi1>, vector<1x63xi32>
    %c57_i32_59 = arith.constant 57 : i32
    %205 = vector.broadcast %c57_i32_59 : i32 to vector<1x63xi32>
    %206 = arith.cmpi sge, %1, %205 : vector<1x63xi32>
    %c60_i32 = arith.constant 60 : i32
    %207 = vector.broadcast %c60_i32 : i32 to vector<1x63xi32>
    %208 = arith.cmpi slt, %1, %207 : vector<1x63xi32>
    %209 = arith.andi %206, %208 : vector<1x63xi1>
    %cst_60 = arith.constant 5.120000e+02 : f32
    %210 = vector.broadcast %cst_60 : f32 to vector<1x63xf32>
    %211 = arith.select %209, %210, %201 : vector<1x63xi1>, vector<1x63xf32>
    %c57_i32_61 = arith.constant 57 : i32
    %212 = vector.broadcast %c57_i32_61 : i32 to vector<1x63xi32>
    %213 = arith.subi %1, %212 : vector<1x63xi32>
    %214 = arith.select %209, %213, %204 : vector<1x63xi1>, vector<1x63xi32>
    %215 = arith.ori %194, %209 : vector<1x63xi1>
    %c60_i32_62 = arith.constant 60 : i32
    %216 = vector.broadcast %c60_i32_62 : i32 to vector<1x63xi32>
    %217 = arith.cmpi sge, %1, %216 : vector<1x63xi32>
    %c63_i32 = arith.constant 63 : i32
    %218 = vector.broadcast %c63_i32 : i32 to vector<1x63xi32>
    %219 = arith.cmpi slt, %1, %218 : vector<1x63xi32>
    %220 = arith.andi %217, %219 : vector<1x63xi1>
    %cst_63 = arith.constant 5.120000e+02 : f32
    %221 = vector.broadcast %cst_63 : f32 to vector<1x63xf32>
    %222 = arith.select %220, %221, %211 : vector<1x63xi1>, vector<1x63xf32>
    %c60_i32_64 = arith.constant 60 : i32
    %223 = vector.broadcast %c60_i32_64 : i32 to vector<1x63xi32>
    %224 = arith.subi %1, %223 : vector<1x63xi32>
    %225 = arith.select %220, %224, %214 : vector<1x63xi1>, vector<1x63xi32>
    %c3_i32_65 = arith.constant 3 : i32
    %226 = vector.broadcast %c3_i32_65 : i32 to vector<1x63xi32>
    %227 = arith.cmpi slt, %1, %226 : vector<1x63xi32>
    %228 = vector.extract_strided_slice %0 {offsets = [0, 2], sizes = [8, 1], strides = [1, 1]} : vector<8x3xf32> to vector<8x1xf32>
    %229 = vector.shape_cast %228 : vector<8x1xf32> to vector<8x1xf32>
    %230 = vector.broadcast %229 : vector<8x1xf32> to vector<8x63xf32>
    %231 = vector.extract_strided_slice %0 {offsets = [0, 1], sizes = [8, 1], strides = [1, 1]} : vector<8x3xf32> to vector<8x1xf32>
    %232 = vector.shape_cast %231 : vector<8x1xf32> to vector<8x1xf32>
    %233 = vector.broadcast %232 : vector<8x1xf32> to vector<8x63xf32>
    %c1_i32 = arith.constant 1 : i32
    %234 = vector.broadcast %c1_i32 : i32 to vector<1x63xi32>
    %235 = arith.cmpi eq, %225, %234 : vector<1x63xi32>
    %236 = vector.shape_cast %235 : vector<1x63xi1> to vector<1x63xi1>
    %237 = vector.broadcast %236 : vector<1x63xi1> to vector<8x63xi1>
    %238 = arith.select %237, %233, %230 : vector<8x63xi1>, vector<8x63xf32>
    %239 = vector.extract_strided_slice %0 {offsets = [0, 0], sizes = [8, 1], strides = [1, 1]} : vector<8x3xf32> to vector<8x1xf32>
    %240 = vector.shape_cast %239 : vector<8x1xf32> to vector<8x1xf32>
    %241 = vector.broadcast %240 : vector<8x1xf32> to vector<8x63xf32>
    %c0_i32_66 = arith.constant 0 : i32
    %242 = vector.broadcast %c0_i32_66 : i32 to vector<1x63xi32>
    %243 = arith.cmpi eq, %225, %242 : vector<1x63xi32>
    %244 = vector.shape_cast %243 : vector<1x63xi1> to vector<1x63xi1>
    %245 = vector.broadcast %244 : vector<1x63xi1> to vector<8x63xi1>
    %246 = arith.select %245, %241, %238 : vector<8x63xi1>, vector<8x63xf32>
    %247 = vector.broadcast %222 : vector<1x63xf32> to vector<8x63xf32>
    %248 = arith.mulf %246, %247 : vector<8x63xf32>
    %249 = math.sin %248 : vector<8x63xf32>
    %250 = math.cos %248 : vector<8x63xf32>
    %251 = vector.shape_cast %215 : vector<1x63xi1> to vector<1x63xi1>
    %252 = vector.broadcast %251 : vector<1x63xi1> to vector<8x63xi1>
    %253 = arith.select %252, %249, %250 : vector<8x63xi1>, vector<8x63xf32>
    %254 = vector.shape_cast %227 : vector<1x63xi1> to vector<1x63xi1>
    %255 = vector.broadcast %254 : vector<1x63xi1> to vector<8x63xi1>
    %256 = arith.select %255, %248, %253 : vector<8x63xi1>, vector<8x63xf32>
    %c0_67 = arith.constant 0 : index
    %c0_68 = arith.constant 0 : index
    %257 = vector.load %arg2[%c0_67, %c0_68] : memref<8x63xf32, #tpu.memory_space<vmem>>, vector<8x63xf32>
    tpu.vector_store %arg2[%c0_67, %c0_68], %256 {strides = array<i32>} : memref<8x63xf32, #tpu.memory_space<vmem>>, vector<8x63xf32>,
    return
  }
  func.func @transform_0(%arg0: i32) -> (i32, i32) {
    %c0_i32 = arith.constant 0 : i32
    %c0_i32_0 = arith.constant 0 : i32
    return %arg0, %c0_i32 : i32, i32
  }
  func.func @transform_1(%arg0: i32) -> (i32, i32) {
    %c0_i32 = arith.constant 0 : i32
    %c0_i32_0 = arith.constant 0 : i32
    return %arg0, %c0_i32 : i32, i32
  }
}

</mosaic_0001>

<bundles_post_ra>
// kernel: tpu_custom_call.1
= control target key start
LH: loop header
LB: loop body
LE: loop exit
PB: predicated region body
PF: predicated region fallthrough
CT: control target
= control target key end

     0   :  { %6 = vsyncpa [#allocation3], 0  ;;  %s1049_s0 = inlined_call_operand.vmem [shape: f32[16,3], index: 0, kind: input, shape index: {}]   ;;  %s1050_s1 = inlined_call_operand.hbm [shape: f32[16,63], index: 1, kind: output, shape index: {}]  }
   0x1   :  { %8 = vsyncpa [#allocation3 + $0x1], 0  ;;  %s745_s6 = smov 0   ;;  %s747_s7 = smov 0  }
   0x2   :  { %s749_s8 = smov 0   ;;  %s751_s9 = smov 0  }
   0x3 LB: > { %s766_s10 = sadd.s32 4294967295, %s722_s9   ;;  %s561_s11 = sadd.s32 4294967294, %s722_s9   ;;  %s722_s9 = sphi %s751_s9, %s1085_s9   ;;  %s718_s8 = sphi %s749_s8, %s1084_s8   ;;  %s714_s7 = sphi %s747_s7, %s1083_s7   ;;  %s710_s6 = sphi %s745_s6, %s1082_s6  }
   0x4   : > { %s770_s12 = sadd.s32 1, %s722_s9   ;;  %s47_s13 = sadd.s32 1, %s718_s8 }
   0x5   : > { %s44_s14 = ssub.s32 %s722_s9, %s770_s12  ;;  %p57_p0 = scmp.ne.s32.totalorder %s718_s8, %s714_s7 }
   0x6   : > { %p45_p1 = scmp.eq.s32.totalorder %s44_s14, 0  ;;  %p58_p2 = scmp.eq.s32.totalorder %s766_s10, 1 }
   0x7   : > { %p63_p3 = scmp.ne.s32.totalorder %s714_s7, %s710_s6  ;;  %p64_p4 = scmp.eq.s32.totalorder %s561_s11, 1 }
   0x8   : > { %s781_s15 = scalar_select %p45_p1, %s718_s8, %s47_s13  }
   0x9   : > { %p783_p5 = por %p58_p2, %p57_p0  ;;  %p787_p6 = por %p64_p4, %p63_p3 }
   0xa   : > { %p564_p7 = scmp.ge.s32.totalorder %s722_s9, 1  ;;  %p89_p8 = scmp.lt.s32.totalorder %s722_s9, 3 }
   0xc   : > { %p90_p9 = pnand %p564_p7, %p89_p8 }
   0xd   : > { %p108_p10 = scmp.lt.s32.totalorder (!%p90_p9), %s766_s10, 1  ;;  %v113_v0 = vlaneseq (!%p90_p9)  ;;  %v724_v1 = vmov (!%p90_p9), 2   ;;  %v725_v2 = vmov (!%p90_p9), 0   ;;  %v726_v9 = vmov (!%p90_p9), 1   ;;  %s105_s23 = sand.u32 (!%p90_p9), 1, %s714_s7  }
   0xe   : > { %93 = sbr.rel (%p90_p9) target bundleno = 258 (0x102), region = 24  ;;  %652 = vset.pattern.permute.xlu0 (!%p90_p9), %v724_v1  ;;  %654 = vset.pattern.permute.xlu1 (!%p90_p9), %v725_v2  ;;  %v1067_v10 = vmov (!%p90_p9), 0  ;;  %v1069_v11 = vmov (!%p90_p9), 0  ;;  %v1071_v12 = vmov (!%p90_p9), 0  ;;  %v727_v22 = vmov (!%p90_p9), 0.0   ;;  %s991_s24 = sshll.u32 (!%p90_p9), %s105_s23, 3 }
   0xf   : > { %v795_v3 = vand.u32 (!%p90_p9), 127, %v113_v0  ;;  %s596_s25 = sshll.u32 (!%p90_p9), %s766_s10, 7  ;;  %s107_s26 = scalar_lea.vmem (!%p90_p9), [#allocation2], %s991_s24 }
  0x10   : > { %s502_s27 = sshll.u32 (!%p90_p9), %s107_s26, 4  ;;  %s1002_s30 = scalar_lea.hbm (!%p90_p9), %s1050_s1, %s596_s25  ;;  %s1004_s27 = int_to_ptr.vmem [resolvable:$true] %s502_s27 }
  0x11   : > { %vm121_vm0 = vcmp.ge.s32.totalorder (!%p90_p9), %v795_v3, 3  ;;  %vm122_vm1 = vcmp.lt.s32.totalorder (!%p90_p9), %v795_v3, 6  ;;  %vm134_vm2 = vcmp.ge.s32.totalorder (!%p90_p9), %v795_v3, 9  ;;  %vm135_vm3 = vcmp.lt.s32.totalorder (!%p90_p9), %v795_v3, 12  ;;  %s489_s2 = scalar_lea.sflag (!%p90_p9), [#allocation3], %s105_s23  ;;  %s660_s3 = scalar_lea.vmem (!%p90_p9), %s1004_s27, 128 }
  0x12   : > { %vm804_vm4 = vmand (!%p90_p9), %vm121_vm0, %vm122_vm1  ;;  %vm147_vm5 = vcmp.ge.s32.totalorder (!%p90_p9), %v795_v3, 15  ;;  %vm148_vm6 = vcmp.lt.s32.totalorder (!%p90_p9), %v795_v3, 18  ;;  %vm160_vm9 = vcmp.ge.s32.totalorder (!%p90_p9), %v795_v3, 21  ;;  %vm161_vm10 = vcmp.lt.s32.totalorder (!%p90_p9), %v795_v3, 24  ;;  %p661_p11 = scmp.ne.s32.totalorder (!%p90_p9), %s1004_s27, %s660_s3  ;;  %s734_s4 = smov (!%p90_p9), [#allocation2]  }
  0x13   : > { %vm810_vm7 = vmand (!%p90_p9), %vm134_vm2, %vm135_vm3  ;;  %vm173_vm13 = vcmp.ge.s32.totalorder (!%p90_p9), %v795_v3, 27  ;;  %vm174_vm14 = vcmp.lt.s32.totalorder (!%p90_p9), %v795_v3, 30  ;;  %vm186_vm1 = vcmp.ge.s32.totalorder (!%p90_p9), %v795_v3, 33  ;;  %vm187_vm2 = vcmp.lt.s32.totalorder (!%p90_p9), %v795_v3, 36  ;;  %s664_s5 = sshll.u32 (!%p90_p9), %s734_s4, 4  ;;  %s665_s5 = int_to_ptr.vmem [resolvable:$false] %s664_s5 }
  0x14   : > { %vm140_vm8 = vmor (!%p90_p9), %vm804_vm4, %vm810_vm7  ;;  %v567_v17 = vadd.s32 (!%p90_p9), 4294967293, %v795_v3  ;;  %v568_v19 = vadd.s32 (!%p90_p9), 4294967290, %v795_v3  ;;  %v569_v21 = vadd.s32 (!%p90_p9), 4294967287, %v795_v3  ;;  %v570_v25 = vadd.s32 (!%p90_p9), 4294967284, %v795_v3  ;;  %p662_p12 = pnand (!%p90_p9), %p661_p11, %p783_p5  ;;  %p667_p0 = scmp.lt.s32.totalorder (!%p90_p9), %s1004_s27, %s665_s5 }
  0x15   : > { %s109_s18 = scalar_select %p108_p10, %s766_s10, 1  ;;  %vm820_vm11 = vmand %vm147_vm5, %vm148_vm6  ;;  %vm199_vm6 = vcmp.ge.s32.totalorder %v795_v3, 39  ;;  %v571_v28 = vadd.s32 4294967281, %v795_v3  ;;  %v572_v31 = vadd.s32 4294967278, %v795_v3  ;;  %v573_v34 = vadd.s32 4294967275, %v795_v3 }
  0x16   : > { %vm153_vm12 = vmor %vm140_vm8, %vm820_vm11  ;;  %vm200_vm8 = vcmp.lt.s32.totalorder %v795_v3, 42  ;;  %v574_v37 = vadd.s32 4294967272, %v795_v3  ;;  %v575_v40 = vadd.s32 4294967269, %v795_v3  ;;  %v576_v43 = vadd.s32 4294967266, %v795_v3  ;;  %p663_p13 = pneg %p662_p12  ;;  %s666_s10 = scalar_lea.vmem %s665_s5, 256 }
  0x17   : > { %s566_s19 = sshll.u32 %s109_s18, 3  ;;  %vm828_vm15 = vmand %vm160_vm9, %vm161_vm10  ;;  %v577_v46 = vadd.s32 4294967263, %v795_v3  ;;  %v578_v49 = vadd.s32 4294967260, %v795_v3  ;;  %v579_v52 = vadd.s32 4294967257, %v795_v3  ;;  %v580_v55 = vadd.s32 4294967254, %v795_v3  ;;  %p668_p1 = scmp.lt.s32.totalorder %s666_s10, %s660_s3 }
  0x18   : > { %s111_s22 = scalar_lea.vmem %s1049_s0, %s566_s19  ;;  %vm166_vm0 = vmor %vm153_vm12, %vm828_vm15  ;;  %vm212_vm12 = vcmp.ge.s32.totalorder %v795_v3, 45  ;;  %v581_v58 = vadd.s32 4294967251, %v795_v3  ;;  %v582_v61 = vadd.s32 4294967248, %v795_v3  ;;  %v583_v0 = vadd.s32 4294967245, %v795_v3 }
  0x19   : > { %v112_v5 = vld [vmem:[%s111_s22] sm:$0xff]  ;;  %vm836_vm3 = vmand %vm173_vm13, %vm174_vm14  ;;  %vm213_vm13 = vcmp.lt.s32.totalorder %v795_v3, 48  ;;  %v584_v4 = vadd.s32 4294967242, %v795_v3  ;;  %v585_v7 = vadd.s32 4294967239, %v795_v3  ;;  %p669_p2 = por %p668_p1, %p667_p0 }
  0x1a   : > { %253 = vperm.xlu0 %652, %v112_v5   ;;  %265 = vperm.xlu1 %654, %v112_v5   ;;  %v1068_v10 = vsel %vm836_vm3, 4294967295, %v1067_v10  ;;  %vm179_vm5 = vmor %vm166_vm0, %vm836_vm3 }
  0x1b   : > { %vm844_vm9 = vmand %vm186_vm1, %vm187_vm2  ;;  %vm225_vm1 = vcmp.ge.s32.totalorder %v795_v3, 51  ;;  %vm226_vm2 = vcmp.lt.s32.totalorder %v795_v3, 54  ;;  %p670_p3 = pnand %p669_p2, %p663_p13 }
  0x1c   : > { %v1070_v11 = vsel %vm844_vm9, 4294967295, %v1069_v11  ;;  %vm192_vm10 = vmor %vm179_vm5, %vm844_vm9 }
  0x1d   : > { %vm852_vm14 = vmand %vm199_vm6, %vm200_vm8  ;;  %vm238_vm6 = vcmp.ge.s32.totalorder %v795_v3, 57  ;;  %vm239_vm8 = vcmp.lt.s32.totalorder %v795_v3, 60 }
  0x1e   : > { %653 = vset.pattern.permute.xlu0 %v726_v9  ;;  %v1072_v12 = vsel %vm852_vm14, 4294967295, %v1071_v12  ;;  %vm205_vm0 = vmor %vm192_vm10, %vm852_vm14 }
  0x1f   : > { %257 = vperm.xlu0 %653, %v112_v5   ;;  %vm860_vm3 = vmand %vm212_vm12, %vm213_vm13  ;;  %vm117_vm13 = vcmp.lt.s32.totalorder %v795_v3, 3 }
  0x20   : > { %vm218_vm5 = vmor %vm205_vm0, %vm860_vm3  ;;  %v120_v18 = vsel %vm117_vm13, %v795_v3, 0  ;;  %vm128_vm0 = vcmp.ge.s32.totalorder %v795_v3, 6  ;;  %v119_v23 = vsel %vm117_vm13, 1.0, %v727_v22 }
  0x21   : > { %vm868_vm9 = vmand %vm225_vm1, %vm226_vm2  ;;  %vm129_vm1 = vcmp.lt.s32.totalorder %v795_v3, 9  ;;  %v126_v20 = vsel %vm804_vm4, %v567_v17, %v120_v18  ;;  %v124_v26 = vsel %vm804_vm4, 1.0, %v119_v23 }
  0x22   : > { %vm231_vm10 = vmor %vm218_vm5, %vm868_vm9  ;;  %vm141_vm5 = vcmp.ge.s32.totalorder %v795_v3, 12 }
  0x23   : > { %655 = vset.pattern.permute.xlu0 %v725_v2  ;;  %vm874_vm14 = vmand %vm238_vm6, %vm239_vm8  ;;  %vm142_vm6 = vcmp.lt.s32.totalorder %v795_v3, 15 }
  0x24   : > { %vm244_vm12 = vmor %vm231_vm10, %vm874_vm14  ;;  %vm154_vm10 = vcmp.ge.s32.totalorder %v795_v3, 18 }
  0x25   : > { %v880_v16 = vsel %vm244_vm12, 1, %v725_v2  ;;  %vm130_vm2 = vmand %vm128_vm0, %vm129_vm1  ;;  %vm155_vm12 = vcmp.lt.s32.totalorder %v795_v3, 21  ;;  %vm167_vm0 = vcmp.ge.s32.totalorder %v795_v3, 24  ;;  %vm168_vm1 = vcmp.lt.s32.totalorder %v795_v3, 27 }
  0x26   : > { %v133_v24 = vsel %vm130_vm2, %v568_v19, %v126_v20  ;;  %vm143_vm8 = vmand %vm141_vm5, %vm142_vm6  ;;  %v131_v29 = vsel %vm130_vm2, 1.0, %v124_v26  ;;  %vm180_vm2 = vcmp.ge.s32.totalorder %v795_v3, 30  ;;  %vm181_vm5 = vcmp.lt.s32.totalorder %v795_v3, 33 }
  0x27   : > { %v139_v27 = vsel %vm810_vm7, %v569_v21, %v133_v24  ;;  %v137_v32 = vsel %vm810_vm7, 2.0, %v131_v29  ;;  %vm156_vm4 = vmand %vm154_vm10, %vm155_vm12  ;;  %vm1079_vm6 = vnez %v1068_v10  ;;  %vm194_vm10 = vcmp.lt.s32.totalorder %v795_v3, 39 }
  0x28   : > { %v146_v30 = vsel %vm143_vm8, %v570_v25, %v139_v27  ;;  %v144_v35 = vsel %vm143_vm8, 2.0, %v137_v32  ;;  %vm169_vm7 = vmand %vm167_vm0, %vm168_vm1  ;;  %vm193_vm8 = vcmp.ge.s32.totalorder %v795_v3, 36  ;;  %vm1080_vm12 = vnez %v1070_v11 }
  0x29   : > { %v152_v33 = vsel %vm820_vm11, %v571_v28, %v146_v30  ;;  %v150_v38 = vsel %vm820_vm11, 4.0, %v144_v35  ;;  %vm182_vm11 = vmand %vm180_vm2, %vm181_vm5  ;;  %vm207_vm0 = vcmp.lt.s32.totalorder %v795_v3, 45  ;;  %vm1081_vm1 = vnez %v1072_v12 }
  0x2a   : > { %v159_v36 = vsel %vm156_vm4, %v572_v31, %v152_v33  ;;  %v157_v41 = vsel %vm156_vm4, 4.0, %v150_v38  ;;  %vm206_vm4 = vcmp.ge.s32.totalorder %v795_v3, 42  ;;  %vm219_vm2 = vcmp.ge.s32.totalorder %v795_v3, 48 }
  0x2b   : > { %v165_v39 = vsel %vm828_vm15, %v573_v34, %v159_v36  ;;  %v163_v44 = vsel %vm828_vm15, 8.0, %v157_v41  ;;  %vm195_vm15 = vmand %vm193_vm8, %vm194_vm10  ;;  %vm220_vm5 = vcmp.lt.s32.totalorder %v795_v3, 51  ;;  %vm233_vm8 = vcmp.lt.s32.totalorder %v795_v3, 57 }
  0x2c   : > { %v172_v42 = vsel %vm169_vm7, %v574_v37, %v165_v39  ;;  %v170_v47 = vsel %vm169_vm7, 8.0, %v163_v44  ;;  %vm208_vm7 = vmand %vm206_vm4, %vm207_vm0  ;;  %v586_v10 = vadd.s32 4294967236, %v795_v3  ;;  %v728_v34 = vmov 683565275  }
  0x2d   : > { %v178_v45 = vsel %vm1079_vm6, %v575_v40, %v172_v42  ;;  %v176_v50 = vsel %vm1079_vm6, 16.0, %v170_v47  ;;  %vm221_vm6 = vmand %vm219_vm2, %vm220_vm5  ;;  %v729_v36 = vmov 2475754826   ;;  %v730_v39 = vmov 2131351028  }
  0x2e   : > { %v185_v48 = vsel %vm182_vm11, %v576_v43, %v178_v45  ;;  %v183_v53 = vsel %vm182_vm11, 16.0, %v176_v50  ;;  %vm232_vm11 = vcmp.ge.s32.totalorder %v795_v3, 54  ;;  %v731_v42 = vmov 2102212464  }
  0x2f   : > { %v191_v51 = vsel %vm1080_vm12, %v577_v46, %v185_v48  ;;  %v189_v56 = vsel %vm1080_vm12, 32.0, %v183_v53  ;;  %vm234_vm10 = vmand %vm232_vm11, %vm233_vm8  ;;  %vm245_vm12 = vcmp.ge.s32.totalorder %v795_v3, 60  ;;  %v732_v45 = vmov 920167782  }
  0x30   : > { %v198_v54 = vsel %vm195_vm15, %v578_v49, %v191_v51  ;;  %v196_v59 = vsel %vm195_vm15, 32.0, %v189_v56  ;;  %vm246_vm15 = vcmp.lt.s32.totalorder %v795_v3, 63  ;;  %v733_v48 = vmov 1326507024  }
  0x31   : > { %v204_v57 = vsel %vm1081_vm1, %v579_v52, %v198_v54  ;;  %v202_v62 = vsel %vm1081_vm1, 64.0, %v196_v59 }
  0x32   : > { %v211_v60 = vsel %vm208_vm7, %v580_v55, %v204_v57  ;;  %v209_v1 = vsel %vm208_vm7, 64.0, %v202_v62 }
  0x33   : > { %v217_v63 = vsel %vm860_vm3, %v581_v58, %v211_v60  ;;  %v215_v5 = vsel %vm860_vm3, 128.0, %v209_v1  ;;  %vm247_vm3 = vmand %vm245_vm12, %vm246_vm15 }
  0x34   : > { %v224_v2 = vsel %vm221_vm6, %v582_v61, %v217_v63  ;;  %v222_v8 = vsel %vm221_vm6, 128.0, %v215_v5 }
  0x35   : > { %v230_v6 = vsel %vm868_vm9, %v583_v0, %v224_v2  ;;  %v228_v11 = vsel %vm868_vm9, 256.0, %v222_v8 }
  0x36   : > { %v237_v9 = vsel %vm234_vm10, %v584_v4, %v230_v6  ;;  %v235_v13 = vsel %vm234_vm10, 256.0, %v228_v11  ;;  %vm481_vm10 = vcmp.eq.s32.totalorder %v880_v16, 1 }
  0x37   : > { %v243_v12 = vsel %vm874_vm14, %v585_v7, %v237_v9  ;;  %v241_v19 = vsel %vm874_vm14, 512.0, %v235_v13 }
  0x38   : > { %v250_v18 = vsel %vm247_vm3, %v586_v10, %v243_v12  ;;  %v248_v22 = vsel %vm247_vm3, 512.0, %v241_v19 }
  0x39   : > { %vm260_vm4 = vcmp.eq.s32.totalorder %v250_v18, 1  ;;  %vm268_vm0 = vcmp.eq.s32.totalorder %v250_v18, 0 }
  0x99   : > { %v254_v17 = vpop.permute.xlu0 %253  ;;  %v266_v20 = vpop.permute.xlu1 %265 }
  0x9e   : > { %v258_v21 = vpop.permute.xlu0 %257 }
  0x9f   : > { %v263_v23 = vsel %vm260_vm4, %v258_v21, %v254_v17 }
  0xa0   : > { %v271_v24 = vsel %vm268_vm0, %v266_v20, %v263_v23 }
  0xa1   : > { %v968_v25 = vmul.f32 %v271_v24, %v248_v22 }
  0xa3   : > { %v276_v14 = vand.u32 2139095040, %v968_v25  ;;  %v273_v29 = vand.u32 2147483647, %v968_v25  ;;  %vm275_vm11 = vcmp.lt.s32.totalorder %v968_v25, 0 }
  0xa5   : > { %v277_v26 = vshrl.u32 %v276_v14, 23  ;;  %v280_v31 = vand.u32 8388607, %v273_v29  ;;  %vm274_vm8 = vcmp.le.f32.partialorder %v273_v29, 0.7853982 }
  0xa7   : > { %v587_v27 = vadd.s32 4294967169, %v277_v26  ;;  %v281_v50 = vor.u32 8388608, %v280_v31 }
  0xa9   : > { %v283_v28 = vadd.s32 1, %v587_v27  ;;  %v321_v0 = vshll.u32 %v281_v50, 8 }
  0xab   : > { %vm284_vm9 = vcmp.gt.s32.totalorder %v283_v28, 0 }
  0xac   : > { %v285_v30 = vsel %vm284_vm9, %v283_v28, 0 }
  0xad   : > { %v287_v15 = vand.u32 31, %v285_v30  ;;  %v286_v33 = vshrl.u32 %v285_v30, 5 }
  0xaf   : > { %v288_v32 = vsub.s32 32, %v287_v15  ;;  %v290_v35 = vshll.u32 %v728_v34, %v287_v15  ;;  %v293_v37 = vshll.u32 %v729_v36, %v287_v15  ;;  %v296_v41 = vshll.u32 %v730_v39, %v287_v15 }
  0xb0   : > { %v299_v44 = vshll.u32 %v731_v42, %v287_v15  ;;  %v302_v47 = vshll.u32 %v732_v45, %v287_v15  ;;  %vm305_vm14 = vcmp.lt.s32.totalorder %v286_v33, 1  ;;  %vm308_vm1 = vcmp.lt.s32.totalorder %v286_v33, 4 }
  0xb1   : > { %v291_v38 = vshrl.u32 %v729_v36, %v288_v32  ;;  %v294_v40 = vshrl.u32 %v730_v39, %v288_v32  ;;  %v297_v43 = vshrl.u32 %v731_v42, %v288_v32  ;;  %v300_v46 = vshrl.u32 %v732_v45, %v288_v32 }
  0xb2   : > { %v303_v49 = vshrl.u32 %v733_v48, %v288_v32  ;;  %v289_v59 = vshrl.u32 %v728_v34, %v288_v32  ;;  %vm307_vm7 = vcmp.lt.s32.totalorder %v286_v33, 3  ;;  %vm306_vm2 = vcmp.lt.s32.totalorder %v286_v33, 2 }
  0xb3   : > { %v292_v51 = vor.u32 %v291_v38, %v290_v35  ;;  %v295_v52 = vor.u32 %v294_v40, %v293_v37  ;;  %v298_v53 = vor.u32 %v297_v43, %v296_v41  ;;  %v301_v54 = vor.u32 %v300_v46, %v299_v44 }
  0xb4   : > { %v304_v55 = vor.u32 %v303_v49, %v302_v47 }
  0xb5   : > { %v310_v56 = vsel %vm308_vm1, %v298_v53, 2102212464  ;;  %v313_v57 = vsel %vm305_vm14, %v292_v51, %v295_v52  ;;  %v317_v58 = vsel %vm305_vm14, %v295_v52, %v298_v53  ;;  %v314_v60 = vsel %vm308_vm1, %v301_v54, 920167782 }
  0xb6   : > { %v318_v61 = vsel %vm308_vm1, %v304_v55, 1326507024  ;;  %v315_v62 = vsel %vm307_vm7, %v298_v53, %v314_v60  ;;  %v309_v1 = vsel %vm305_vm14, %v289_v59, %v292_v51  ;;  %v311_v2 = vsel %vm307_vm7, %v295_v52, %v310_v56 }
  0xb7   : > { %v319_v63 = vsel %vm307_vm7, %v301_v54, %v318_v61  ;;  %v316_v4 = vsel %vm306_vm2, %v313_v57, %v315_v62  ;;  %v312_v10 = vsel %vm306_vm2, %v309_v1, %v311_v2  ;;  %vm365_vm14 = vweird.f32 %v968_v25 }
  0xb8   : > { %v320_v5 = vsel %vm306_vm2, %v317_v58, %v319_v63  ;;  %v977_v8 = vmul.u32.u64.low %v321_v0, %v316_v4  ;;  %v978_v9 = vmul.u32.u64.high %v321_v0, %v316_v4, %v977_v8  ;;  %v328_v12 = vmul.u32 %v321_v0, %v312_v10 }
  0xb9   : > { %v974_v6 = vmul.u32.u64.low %v321_v0, %v320_v5  ;;  %v975_v7 = vmul.u32.u64.high %v321_v0, %v320_v5, %v974_v6  ;;  %vm486_vm1 = vcmask 515072  }
  0xba   : > { %v331_v11 = vadd.s32 1, %v978_v9 }
  0xbb   : > { %vm330_vm5 = vc.u32 %v975_v7, %v977_v8  ;;  %v329_v27 = vadd.s32 %v977_v8, %v975_v7 }
  0xbc   : > { %v332_v13 = vsel %vm330_vm5, %v331_v11, %v978_v9 }
  0xbd   : > { %v333_v17 = vadd.s32 %v332_v13, %v328_v12 }
  0xbf   : > { %v334_v18 = vadd.s32 536870912, %v333_v17 }
  0xc1   : > { %v335_v19 = vshrl.u32 %v334_v18, 30 }
  0xc3   : > { %v336_v20 = vshll.u32 %v335_v19, 30  ;;  %v359_v39 = vsub.s32 4, %v335_v19 }
  0xc5   : > { %v337_v21 = vsub.s32 %v333_v17, %v336_v20  ;;  %v360_v42 = vsel %vm275_vm11, %v359_v39, %v335_v19 }
  0xc6   : > { %v362_v44 = vsel %vm274_vm8, 0, %v360_v42 }
  0xc7   : > { %v339_v22 = vsub.s32 0, %v337_v21  ;;  %v366_v45 = vadd.s32 3, %v362_v44  ;;  %v470_v47 = vand.u32 3, %v362_v44 }
  0xc9   : > { %v588_v23 = vmin.u32 %v339_v22, %v337_v21  ;;  %v367_v46 = vand.u32 3, %v366_v45  ;;  %vm475_vm15 = vcmp.eq.s32.totalorder %v470_v47, 2  ;;  %vm472_vm4 = vcmp.eq.s32.totalorder %v470_v47, 0 }
  0xca   : > { %vm471_vm9 = vcmp.lt.s32.totalorder %v470_v47, 2 }
  0xcb   : > { %v341_v24 = vclz %v588_v23  ;;  %vm372_vm12 = vcmp.eq.s32.totalorder %v367_v46, 2  ;;  %vm369_vm3 = vcmp.eq.s32.totalorder %v367_v46, 0  ;;  %vm368_vm0 = vcmp.lt.s32.totalorder %v367_v46, 2 }
  0xcd   : > { %v589_v14 = vadd.s32 4294967294, %v341_v24 }
  0xcf   : > { %vm590_vm6 = vcmp.lt.s32.totalorder %v589_v14, 0 }
  0xd0   : > { %v344_v26 = vsel %vm590_vm6, 0, %v589_v14 }
  0xd1   : > { %v345_v28 = vsub.s32 32, %v344_v26  ;;  %v349_v30 = vsub.s32 4294967266, %v344_v26  ;;  %v346_v15 = vshll.u32 %v337_v21, %v344_v26 }
  0xd3   : > { %v347_v31 = vshrl.u32 %v329_v27, %v345_v28  ;;  %v350_v32 = vadd.s32 127, %v349_v30 }
  0xd5   : > { %v348_v33 = vor.u32 %v347_v31, %v346_v15  ;;  %v351_v34 = vshll.u32 %v350_v32, 23 }
  0xd7   : > { %v352_v35 = vor.u32 4788187, %v351_v34  ;;  %v355_v37 = vcvt.s32.f32 %v348_v33 }
  0xd9   : > { %v353_v36 = vand.u32 2147483647, %v352_v35 }
  0xdb   : > { %v356_v38 = vmul.f32 %v355_v37, %v353_v36 }
  0xdd   : > { %v357_v40 = vxor.u32 2147483648, %v356_v38 }
  0xdf   : > { %v358_v41 = vsel %vm275_vm11, %v357_v40, %v356_v38 }
  0xe0   : > { %v361_v43 = vsel %vm274_vm8, %v968_v25, %v358_v41 }
  0xe1   : > { %656 = vcosq.f32 %v361_v43 }
  0xe2   : > { %658 = vsinq.f32 %v361_v43 }
  0xeb   : > { %v657_v48 = vpop.eup %656 }
  0xec   : > { %v659_v49 = vpop.eup %658  ;;  %v373_v50 = vxor.u32 2147483648, %v657_v48 }
  0xed   : > { %v370_v29 = vxor.u32 2147483648, %v659_v49 }
  0xee   : > { %v374_v51 = vsel %vm372_vm12, %v373_v50, %v659_v49  ;;  %v477_v52 = vsel %vm475_vm15, %v373_v50, %v659_v49 }
  0xef   : > { %v371_v53 = vsel %vm369_vm3, %v657_v48, %v370_v29  ;;  %v474_v54 = vsel %vm472_vm4, %v657_v48, %v370_v29 }
  0xf0   : > { %v375_v55 = vsel %vm368_vm0, %v371_v53, %v374_v51  ;;  %v478_v56 = vsel %vm471_vm9, %v474_v54, %v477_v52 }
  0xf1   : > { %v376_v57 = vsel %vm365_vm14, nan, %v375_v55  ;;  %v479_v58 = vsel %vm365_vm14, nan, %v478_v56 }
  0xf2   : > { %v482_v59 = vsel %vm481_vm10, %v376_v57, %v479_v58 }
  0xf3   : > { %v485_v60 = vsel %vm117_vm13, %v968_v25, %v482_v59 }
  0xf4   : > { %487 = vst.msk [vmem:[%s107_s26] sm:$0xff] %vm486_vm1, %v485_v60 }
  0xf5   : > { %673 = shalt.err (!%p670_p3)
}
  0xf6   : > { %s674_s11 = scalar_lea.hbm %s1002_s30, 128  ;;  %s678_s18 = scalar_lea.hbm %s1050_s1, 256 }
  0xf7   : > { %p675_p4 = scmp.ne.s32.totalorder %s1002_s30, %s674_s11  ;;  %p679_p9 = scmp.lt.u32.totalorder %s1002_s30, %s1050_s1 }
  0xf8   : > { %p680_p10 = scmp.lt.u32.totalorder %s678_s18, %s674_s11  ;;  %p682_p12 = scmp.lt.u32.totalorder %s674_s11, %s1002_s30 }
  0xf9   : > { %p676_p7 = pnand %p675_p4, %p783_p5 }
  0xfa   : > { %p681_p11 = por %p680_p10, %p679_p9 }
  0xfb   : > { %p677_p8 = pneg %p676_p7 }
  0xfc   : > { %p683_p13 = por %p682_p12, %p681_p11 }
  0xfe   : > { %p684_p0 = pnand %p683_p13, %p677_p8 }
 0x100   : > { %687 = shalt.err (!%p684_p0)
}
 0x101   : > { %603 = dma.vmem_to_hbm [thread:$0]  (%p783_p5), %s1004_s27, 128, %s1002_s30, %s489_s2  }
 0x102 PF: > { %p609_p1 = scmp.ge.s32.totalorder %s722_s9, 2  ;;  %s514_s21 = sand.u32 1, %s710_s6  }
 0x103   : > { %s515_s22 = scalar_lea.sflag [#allocation3], %s514_s21 }
 0x104   : > { %p606_p2 = pnand %p609_p1, %p787_p6 }
 0x106   : > { %705 = dma.done.wait (!%p606_p2), %s515_s22, 128  }
 0x107   : > { %707 = vsyncadd (!%p606_p2), %s515_s22, 4294967168  ;;  %p11_p3 = scmp.ge.s32.totalorder %s770_s12, 4   ;;  %s1082_s6 = smov %s714_s7 }
 0x108   : > { %s1083_s7 = smov %s718_s8  ;;  %s1084_s8 = smov %s781_s15 }
 0x109   : > { %s1085_s9 = smov %s770_s12  ;;  %13 = sbr.rel (!%p11_p3) target bundleno = 3 (0x3), region = 59 }
 0x110   :  { %520 = vsyncpa [#allocation3], 1 }
 0x111   :  { %522 = vsyncpa [#allocation3 + $0x1], 1 }

</bundles_post_ra>
